<compile_context>
chip_gen: v6e
topology: v6e:2x2x1
jax: 0.10.0
libtpu: 0.0.40
codegen_flags: <defaults>
</compile_context>

<pallas_src>
import functools

import jax
import jax.numpy as jnp
from jax.experimental import pallas as pl
from jax.experimental.pallas import tpu as pltpu


def _round_up(v, m):
    return ((v + m - 1) // m) * m


def _pick_mn_tile(dim, min_align):
    """Tile size from {512, 256, 128} minimizing padding waste; for dims
    <= 128 use the min_align-rounded full extent."""
    if dim <= 128:
        return max(min_align, _round_up(dim, min_align))
    best_c, best_pad = None, None
    for c in (512, 256, 128):
        pad = _round_up(dim, c)
        if best_pad is None or pad < best_pad or (pad == best_pad and c > best_c):
            best_c, best_pad = c, pad
    return best_c


def _linear_add_kernel(x_ref, w_ref, b_ref, r_ref, o_ref, *, nk):
    """One (i, j, k) grid step of  out = x @ W + b + r   (W already (K, N)).

    x_ref: (tm, tk) bf16     w_ref: (tk, tn) bf16
    b_ref: (1,  tn) f32      r_ref: (tm, tn) f32
    o_ref: (tm, tn) f32  -- doubles as the K accumulator (no scratch, no
                            zero-fill).
    """
    partial = jnp.dot(x_ref[...], w_ref[...], preferred_element_type=jnp.float32)

    if nk == 1:
        # K-resident fast path: single fused store, no RMW, no branches.
        o_ref[...] = partial + b_ref[...] + r_ref[...]
    else:
        k = pl.program_id(2)

        @pl.when(k == 0)
        def _():
            o_ref[...] = partial

        @pl.when(jnp.logical_and(k > 0, k < nk - 1))
        def _():
            o_ref[...] += partial

        @pl.when(k == nk - 1)
        def _():
            # fused final accumulate + bias + residual epilogue (one RMW saved)
            o_ref[...] = o_ref[...] + partial + b_ref[...] + r_ref[...]


@functools.partial(jax.jit, static_argnames=("tm", "tn", "tk"))
def linear_add(x, weight, bias, y, *, tm=None, tn=None, tk=None):
    """out = (x @ weight.T + bias) + y
    x: (..., K), weight: (N, K) (PyTorch Linear layout), bias: (N,) or None,
    y: broadcast-compatible with (..., N)."""
    *lead, K = x.shape
    N = weight.shape[0]
    M = 1
    for d in lead:
        M *= d

    out_dtype = jnp.result_type(x.dtype, weight.dtype, y.dtype)

    # bf16 streamed operands, f32 accumulation / epilogue.
    x2d = x.reshape(M, K).astype(jnp.bfloat16)
    wt = weight.astype(jnp.bfloat16).T           # (K, N): MXU-native NN layout
    if bias is None:                             # Linear(bias=False)
        bias = jnp.zeros((N,), jnp.float32)
    b2 = bias.reshape(1, N).astype(jnp.float32)
    r2d = jnp.broadcast_to(y, (*lead, N)).reshape(M, N).astype(jnp.float32)

    # ---- tile selection ----------------------------------------------------
    if tm is None:
        tm = _pick_mn_tile(M, 8)
    else:
        tm = max(8, _round_up(tm, 8))
    if tn is None:
        tn = _pick_mn_tile(N, 128)
    else:
        tn = max(128, _round_up(tn, 128))

    Kp128 = _round_up(K, 128)
    if tk is None:
        # Keep the double-buffered working set (bf16 x/W panels + f32
        # residual/out tiles) under ~28 MiB -> fits every generation
        # (v7x: 64 MiB physical VMEM per TC is the tightest).
        budget = 28 * 1024 * 1024
        fixed = 16 * tm * tn                     # (residual + out) f32, 2x buffered
        per_k = 4 * (tm + tn)                    # (x + W) bf16, 2x buffered
        tk_fit = max(512, ((budget - fixed) // per_k) // 128 * 128)
        tk = min(Kp128, tk_fit)                  # tk == K when it fits -> 1 K step
    else:
        tk = max(128, _round_up(tk, 128))
    tk = min(tk, Kp128)

    Mp, Np, Kp = _round_up(M, tm), _round_up(N, tn), _round_up(K, tk)

    # Pad only what is strictly required by the tile grid.
    if (Mp, Kp) != (M, K):
        x2d = jnp.pad(x2d, ((0, Mp - M), (0, Kp - K)))
    if (Kp, Np) != (K, N):
        wt = jnp.pad(wt, ((0, Kp - K), (0, Np - N)))
    if Np != N:
        b2 = jnp.pad(b2, ((0, 0), (0, Np - N)))
    if (Mp, Np) != (M, N):
        r2d = jnp.pad(r2d, ((0, Mp - M), (0, Np - N)))

    grid = (Mp // tm, Np // tn, Kp // tk)
    nk = grid[2]

    out = pl.pallas_call(
        functools.partial(_linear_add_kernel, nk=nk),
        out_shape=jax.ShapeDtypeStruct((Mp, Np), jnp.float32),
        grid_spec=pltpu.PrefetchScalarGridSpec(
            num_scalar_prefetch=0,
            grid=grid,
            in_specs=[
                pl.BlockSpec((tm, tk), lambda i, j, k: (i, k)),   # x  (bf16)
                pl.BlockSpec((tk, tn), lambda i, j, k: (k, j)),   # W^T (bf16, (K,N))
                pl.BlockSpec((1, tn), lambda i, j, k: (0, j)),    # bias (f32)
                pl.BlockSpec((tm, tn), lambda i, j, k: (i, j)),   # residual (f32)
            ],
            out_specs=pl.BlockSpec((tm, tn), lambda i, j, k: (i, j)),
        ),
        compiler_params=pltpu.CompilerParams(
            dimension_semantics=("parallel", "parallel", "arbitrary"),
            vmem_limit_bytes=48 * 1024 * 1024,
        ),
    )(x2d, wt, b2, r2d)

    if (Mp, Np) != (M, N):
        out = out[:M, :N]
    return out.reshape(*lead, N).astype(out_dtype)


if __name__ == "__main__":
    # small shapes consistent with a Linear over a (batch, seq, hidden) input
    batch, seq, in_features, out_features = 2, 8, 32, 64

    key = jax.random.PRNGKey(0)
    kx, kw, kb, ky = jax.random.split(key, 4)

    x = jax.random.normal(kx, (batch, seq, in_features), dtype=jnp.float32)
    # PyTorch Linear parameter layout: weight (out, in), bias (out,)
    weight = jax.random.normal(kw, (out_features, in_features), dtype=jnp.float32) * 0.05
    bias = jax.random.normal(kb, (out_features,), dtype=jnp.float32) * 0.05
    y = jax.random.normal(ky, (batch, seq, out_features), dtype=jnp.float32)

    out = linear_add(x, weight, bias, y)
    out = jax.block_until_ready(out)

    # reference check in plain JAX: linear(x) + y
    ref = x.reshape(-1, in_features) @ weight.T + bias
    ref = ref.reshape(batch, seq, out_features) + y
    assert out.shape == ref.shape
    # bf16 streamed operands with f32 accumulation -> modest tolerance
    assert jnp.allclose(out, ref, atol=2e-2, rtol=2e-2), "mismatch vs reference"

    print("KERNEL_OK")
</pallas_src>

<mosaic_0001>
module attributes {stable_mosaic.version = 11 : i64} {
  func.func @_linear_add_kernel(%arg0: i32, %arg1: i32, %arg2: i32, %arg3: memref<16x128xbf16, #tpu.memory_space<vmem>>, %arg4: memref<128x128xbf16, #tpu.memory_space<vmem>>, %arg5: memref<1x128xf32, #tpu.memory_space<vmem>>, %arg6: memref<16x128xf32, #tpu.memory_space<vmem>>, %arg7: memref<16x128xf32, #tpu.memory_space<vmem>>) attributes {dimension_semantics = [#tpu.dimension_semantics<parallel>, #tpu.dimension_semantics<parallel>, #tpu.dimension_semantics<arbitrary>], iteration_bounds = array<i64: 1, 1, 1>, scalar_prefetch = 0 : i64, scratch_operands = 0 : i64, tpu.core_type = #tpu.core_type<tc>, window_params = [{transform_indices = @transform_0, window_bounds = array<i64: 16, 128>}, {transform_indices = @transform_1, window_bounds = array<i64: 128, 128>}, {transform_indices = @transform_2, window_bounds = array<i64: 1, 128>}, {transform_indices = @transform_3, window_bounds = array<i64: 16, 128>}, {transform_indices = @transform_4, window_bounds = array<i64: 16, 128>}]} {
    %c0 = arith.constant 0 : index
    %c0_0 = arith.constant 0 : index
    %0 = vector.load %arg3[%c0, %c0_0] : memref<16x128xbf16, #tpu.memory_space<vmem>>, vector<16x128xbf16>
    %c0_1 = arith.constant 0 : index
    %c0_2 = arith.constant 0 : index
    %1 = vector.load %arg4[%c0_1, %c0_2] : memref<128x128xbf16, #tpu.memory_space<vmem>>, vector<128x128xbf16>
    %cst = arith.constant dense<0.000000e+00> : vector<16x128xf32>
    %2 = tpu.matmul %0, %1, %cst {dimension_numbers = #tpu.dot_dimension_numbers<[1], [0], [0], [1], [0, 0, 1, 1], [], []>} : vector<16x128xbf16>, vector<128x128xbf16>, vector<16x128xf32> -> vector<16x128xf32>
    %c0_3 = arith.constant 0 : index
    %c0_4 = arith.constant 0 : index
    %3 = vector.load %arg5[%c0_3, %c0_4] : memref<1x128xf32, #tpu.memory_space<vmem>>, vector<1x128xf32>
    %4 = vector.broadcast %3 : vector<1x128xf32> to vector<16x128xf32>
    %5 = arith.addf %2, %4 : vector<16x128xf32>
    %c0_5 = arith.constant 0 : index
    %c0_6 = arith.constant 0 : index
    %6 = vector.load %arg6[%c0_5, %c0_6] : memref<16x128xf32, #tpu.memory_space<vmem>>, vector<16x128xf32>
    %7 = arith.addf %5, %6 : vector<16x128xf32>
    %c0_7 = arith.constant 0 : index
    %c0_8 = arith.constant 0 : index
    %8 = vector.load %arg7[%c0_7, %c0_8] : memref<16x128xf32, #tpu.memory_space<vmem>>, vector<16x128xf32>
    tpu.vector_store %arg7[%c0_7, %c0_8], %7 {strides = array<i32>} : memref<16x128xf32, #tpu.memory_space<vmem>>, vector<16x128xf32>,
    return
  }
  func.func @transform_0(%arg0: i32, %arg1: i32, %arg2: i32) -> (i32, i32) {
    %c0_i32 = arith.constant 0 : i32
    return %arg0, %arg2 : i32, i32
  }
  func.func @transform_1(%arg0: i32, %arg1: i32, %arg2: i32) -> (i32, i32) {
    %c0_i32 = arith.constant 0 : i32
    return %arg2, %arg1 : i32, i32
  }
  func.func @transform_2(%arg0: i32, %arg1: i32, %arg2: i32) -> (i32, i32) {
    %c0_i32 = arith.constant 0 : i32
    %c0_i32_0 = arith.constant 0 : i32
    return %c0_i32, %arg1 : i32, i32
  }
  func.func @transform_3(%arg0: i32, %arg1: i32, %arg2: i32) -> (i32, i32) {
    %c0_i32 = arith.constant 0 : i32
    return %arg0, %arg1 : i32, i32
  }
  func.func @transform_4(%arg0: i32, %arg1: i32, %arg2: i32) -> (i32, i32) {
    %c0_i32 = arith.constant 0 : i32
    return %arg0, %arg1 : i32, i32
  }
}

</mosaic_0001>

<bundles_post_ra>
// kernel: linear_add.1
= control target key start
LH: loop header
LB: loop body
LE: loop exit
PB: predicated region body
PF: predicated region fallthrough
CT: control target
= control target key end

     0   :  { %v198_v0 = vmov 0.0   ;;  %vm199_vm0 = vmmov 0   ;;  %s267_s1 = inlined_call_operand.vmem [shape: bf16[128,128], index: 1, kind: input, shape index: {}]   ;;  %s268_s0 = inlined_call_operand.vmem [shape: bf16[16,128], index: 0, kind: input, shape index: {}]   ;;  %s269_s2 = inlined_call_operand.vmem [shape: f32[1,128], index: 2, kind: input, shape index: {}]   ;;  %s270_s3 = inlined_call_operand.vmem [shape: f32[16,128], index: 3, kind: input, shape index: {}]   ;;  %s271_s4 = inlined_call_operand.vmem [shape: f32[16,128], index: 4, kind: output, shape index: {}]  }
   0x1   :  { %167 = vmatprep.subr.bf16.mxu0 %v198_v0  ;;  %v189_v1 = vld [vmem:[%s267_s1 + $0x38] sm:$0xff]   ;;  %183 = vmatprep.mubr.msk.bf16.mxu0 %vm199_vm0, %v198_v0  ;;  %v190_v2 = vld [vmem:[%s267_s1 + $0x30] sm:$0xff]   ;;  %v191_v3 = vld [vmem:[%s267_s1 + $0x28] sm:$0xff]  }
   0x2   :  { %168 = vmatpush3.bf16.msra.mxu0 %v189_v1  ;;  %v192_v4 = vld [vmem:[%s267_s1 + $0x20] sm:$0xff]   ;;  %v193_v5 = vld [vmem:[%s267_s1 + $0x18] sm:$0xff]   ;;  %v194_v6 = vld [vmem:[%s267_s1 + $0x10] sm:$0xff]  }
   0x3   :  { %169 = vmatprep.subr.bf16.mxu0 %v198_v0  ;;  %v195_v7 = vld [vmem:[%s267_s1 + $0x8] sm:$0xff]   ;;  %v196_v8 = vld [vmem:[%s267_s1] sm:$0xff]  }
   0x4   :  { %v197_v9 = vld [vmem:[%s268_s0] sm:$0xff]   ;;  %v139_v17 = vld [vmem:[%s270_s3 + $0x8] sm:$0xff] }
   0x5   :  { %v148_v10 = vld [vmem:[%s269_s2] ss:$0 sm:$0xff] }
   0x6   :  { %170 = vmatpush3.bf16.msra.mxu0 %v190_v2  ;;  %v138_v12 = vld [vmem:[%s270_s3] sm:$0xff] }
   0x7   :  { %171 = vmatprep.subr.bf16.mxu0 %v198_v0 }
   0xa   :  { %172 = vmatpush3.bf16.msra.mxu0 %v191_v3 }
   0xb   :  { %173 = vmatprep.subr.bf16.mxu0 %v198_v0 }
   0xe   :  { %174 = vmatpush3.bf16.msra.mxu0 %v192_v4 }
   0xf   :  { %175 = vmatprep.subr.bf16.mxu0 %v198_v0 }
  0x12   :  { %176 = vmatpush3.bf16.msra.mxu0 %v193_v5 }
  0x13   :  { %177 = vmatprep.subr.bf16.mxu0 %v198_v0 }
  0x16   :  { %178 = vmatpush3.bf16.msra.mxu0 %v194_v6 }
  0x17   :  { %179 = vmatprep.subr.bf16.mxu0 %v198_v0 }
  0x1a   :  { %180 = vmatpush3.bf16.msra.mxu0 %v195_v7 }
  0x1b   :  { %181 = vmatprep.subr.bf16.mxu0 %v198_v0 }
  0x1e   :  { %182 = vmatpush3.bf16.msra.mxu0 %v196_v8 }
  0x21   :  { %184 = vmatmul.mubr.bf16.vlgmr.msra.gmra.mxu0 %v197_v9 }
  0xe1   :  { %v131_v11 = vpop.f32.mrf.mxu0 }
  0xe2   :  { %v132_v13 = vadd.f32 %v148_v10, %v131_v11 }
  0xe3   :  { %v185_v14 = vpop.f32.mrf.mxu0 }
  0xe4   :  { %v140_v15 = vadd.f32 %v138_v12, %v132_v13 }
  0xe5   :  { %v134_v16 = vpop.f32.mrf.mxu0 }
  0xe6   :  { %142 = vst [vmem:[%s271_s4] sm:$0xff] %v140_v15  ;;  %v135_v18 = vadd.f32 %v148_v10, %v134_v16 }
  0xe7   :  { %v186_v19 = vpop.f32.mrf.mxu0 }
  0xe8   :  { %v141_v20 = vadd.f32 %v139_v17, %v135_v18 }
  0xea   :  { %143 = vst [vmem:[%s271_s4 + $0x8] sm:$0xff] %v141_v20 }

</bundles_post_ra>
